<compile_context>
chip_gen: v5e
topology: v5e:2x2
jax: 0.10.0
libtpu: 0.0.40
codegen_flags: <defaults>
</compile_context>

<pallas_src>
import functools

import numpy as np
import jax
import jax.numpy as jnp
from jax.experimental import pallas as pl
from jax.experimental.pallas import tpu as pltpu

EPS = 1e-10
NUM_MC_SAMPLES = 15

CHUNK = 256                 # lane sub-block kept register-resident per step
MAX_CHUNKS_PER_TILE = 32    # -> grid tiles of up to 8192 points


def _softplus(z):
    # Numerically stable softplus, matches torch.nn.Softplus.  (log1p would be
    # marginally more accurate near z=0 but log(1+exp) has a proven Mosaic
    # lowering and the difference is ~1e-7 absolute.)
    return jnp.maximum(z, 0.0) + jnp.log(1.0 + jnp.exp(-jnp.abs(z)))


def _default_compute_dtype():
    """bf16 hidden chain on bf16-native chips (v6e / v7x); f32 on older gens."""
    try:
        kind = jax.devices()[0].device_kind.lower()
    except Exception:
        return jnp.float32
    if any(v in kind for v in ("v2", "v3", "v4", "v5")):
        return jnp.float32
    return jnp.bfloat16


# ----------------------------------------------------------------------------
# Pallas kernel: evaluate f() on a lane-dense tile of TILE scalar points.
#   t_ref   : [1, TILE]  points on lanes (f32)
#   pk_ref  : [H, 8]     packed small params: w1 | b1 | b2 | b3 | w4 | b4 | 0 | 0
#   w2t_ref : [H, H]     transposed weights (compute dtype) so y = W^T @ h
#   w3t_ref : [H, H]
#   o_ref   : [1, TILE]  softplus output (f32)
# ----------------------------------------------------------------------------
def mlp_f_kernel(t_ref, pk_ref, w2t_ref, w3t_ref, o_ref, *, compute_dtype):
    cdt = compute_dtype
    H = pk_ref.shape[0]
    tile = t_ref.shape[1]
    n_chunks = tile // CHUNK

    # Unpack the packed params and hoist the lane-broadcasts of the tiny [H,1]
    # columns out of the chunk loop (done once per grid step).
    pk = pk_ref[...]                                            # [H, 8] f32
    w1b = jnp.broadcast_to(pk[:, 0:1].astype(cdt), (H, CHUNK))  # layer-1 weight
    b1b = jnp.broadcast_to(pk[:, 1:2].astype(cdt), (H, CHUNK))  # layer-1 bias
    b2b = jnp.broadcast_to(pk[:, 2:3], (H, CHUNK))              # f32 (added to f32 MXU acc)
    b3b = jnp.broadcast_to(pk[:, 3:4], (H, CHUNK))              # f32
    w4c = pk[:, 4:5]                                            # [H, 1] f32
    b4 = pk[0:1, 5:6]                                           # [1, 1] f32
    w2t = w2t_ref[...]                                          # [H, H] cdt
    w3t = w3t_ref[...]                                          # [H, H] cdt

    # Register-resident chunk loop.  Fully unrolled with static, 256-aligned
    # lane slices (== lax.fori_loop(..., unroll=True) after unrolling, but with
    # zero dynamic address math); the whole chain for one chunk is 4-16 vregs,
    # so nothing spills between the EUP (tanh), MXU (dots) and VPU.
    for c in range(n_chunks):
        sl = slice(c * CHUNK, (c + 1) * CHUNK)
        t = t_ref[:, sl].astype(cdt)                                  # [1, C]
        # layer 1: sublane-broadcast of t, hoisted lane-broadcast weights.
        h = jnp.tanh(w1b * t + b1b)                                   # [H, C]
        # layers 2/3: MXU matmuls (f32 accumulation), tanh in compute dtype.
        h = jnp.tanh((jnp.dot(w2t, h, preferred_element_type=jnp.float32)
                      + b2b).astype(cdt))
        h = jnp.tanh((jnp.dot(w3t, h, preferred_element_type=jnp.float32)
                      + b3b).astype(cdt))
        # layer 4 (H -> 1): f32 cross-sublane reduce (XLU/VPU have slack here).
        z = jnp.sum(w4c * h.astype(jnp.float32), axis=0, keepdims=True) + b4
        o_ref[:, sl] = _softplus(z)                                   # [1, C]


def _select_tile(n_points):
    """Grid-step size in points: as big as possible (<= 8192, multiple of
    CHUNK) while keeping >= 2 grid steps whenever there are >= 2 chunks of
    work, so both v7x TensorCores are used; padding waste stays < 1 chunk."""
    rows = -(-n_points // CHUNK)
    steps = max(2, -(-rows // MAX_CHUNKS_PER_TILE))
    tile_rows = max(1, -(-rows // steps))
    return tile_rows * CHUNK


def apply_f_pallas(points, params, *, compute_dtype=None):
    """Evaluate the 4-layer MLP f on a flat vector of points (tiled Pallas)."""
    w1, b1, w2, b2, w3, b3, w4, b4 = params
    H = w2.shape[0]
    P = points.shape[0]
    if compute_dtype is None:
        compute_dtype = _default_compute_dtype()

    tile = _select_tile(P)
    n_tiles = -(-P // tile)
    P_pad = n_tiles * tile
    pts = jnp.pad(points.astype(jnp.float32), (0, P_pad - P)).reshape(1, P_pad)

    # Pack the six tiny parameters into one [H, 8] array -> one BlockSpec/DMA.
    pk = jnp.zeros((H, 8), jnp.float32)
    pk = pk.at[:, 0].set(w1[0, :])
    pk = pk.at[:, 1].set(b1[0, :])
    pk = pk.at[:, 2].set(b2[0, :])
    pk = pk.at[:, 3].set(b3[0, :])
    pk = pk.at[:, 4].set(w4[:, 0])
    pk = pk.at[:, 5].set(b4[0, 0])

    # Transposed hidden weights: hidden dim on sublanes, point dim is N.
    w2t = jnp.transpose(w2).astype(compute_dtype)
    w3t = jnp.transpose(w3).astype(compute_dtype)

    kernel = functools.partial(mlp_f_kernel, compute_dtype=compute_dtype)
    full = lambda i: (0, 0)
    out = pl.pallas_call(
        kernel,
        out_shape=jax.ShapeDtypeStruct((1, P_pad), jnp.float32),
        grid_spec=pltpu.PrefetchScalarGridSpec(
            num_scalar_prefetch=0,
            grid=(P_pad // tile,),
            in_specs=[
                pl.BlockSpec((1, tile), lambda i: (0, i)),   # points (lanes)
                pl.BlockSpec((H, 8), full),                  # packed params
                pl.BlockSpec((H, H), full),                  # w2^T
                pl.BlockSpec((H, H), full),                  # w3^T
            ],
            out_specs=pl.BlockSpec((1, tile), lambda i: (0, i)),
        ),
        compiler_params=pltpu.CompilerParams(
            dimension_semantics=("parallel",)),
    )(pts, pk, w2t, w3t)
    return out[0, :P]


def apply_f_reference(points, params):
    """Pure-JAX reference of the same MLP (for correctness checks)."""
    w1, b1, w2, b2, w3, b3, w4, b4 = params
    t = points[:, None].astype(jnp.float32)
    h = jnp.tanh(t * w1 + b1)
    h = jnp.tanh(h @ w2 + b2)
    h = jnp.tanh(h @ w3 + b3)
    z = h @ w4 + b4
    return _softplus(z)[:, 0]


# ----------------------------------------------------------------------------
# Forward pass of MonteCarloSameInfluenceProcess (t_end=None path).
# ----------------------------------------------------------------------------
def forward(seq_pads, seq_lens, params, background, *, t_end=None,
            mc_key, apply_fn):
    batch, maxlen, _ = seq_pads.shape
    t = seq_pads[..., 0]                                              # [B, L]

    # t_last = seq_pads[b, seq_lens[b]-1]
    t_last = jnp.take_along_axis(t, (seq_lens - 1)[:, None], axis=1)[:, 0]

    # Strict-lower-triangle pairwise differences t_i - t_k (k < i), compacted
    # with STATIC indices (~2x fewer points than the full LxL difference).
    rows, cols = np.tril_indices(maxlen, k=-1)                        # [n_pairs]
    n_pairs = rows.shape[0]
    diff_pairs = t[:, rows] - t[:, cols]                              # [B, n_pairs]

    # Remaining time until t_end (padding positions contribute 0).
    te = t_last if t_end is None else jnp.full((batch,), t_end, jnp.float32)
    pos = jnp.arange(maxlen)[None, :]
    valid = pos < seq_lens[:, None]                                   # [B, L]
    diff_w_last = jnp.where(valid, te[:, None] - t, 0.0)              # [B, L]

    # Monte-Carlo sample points (torch.rand_like -> JAX uniform).
    u = jax.random.uniform(mc_key, (NUM_MC_SAMPLES, batch, maxlen), jnp.float32)
    rand_time = u * diff_w_last[None]                                 # [S, B, L]
    # TODO(synk): MC points at padded positions (diff_w_last==0) are still
    # evaluated and masked; dynamic per-sequence compaction by seq_lens would
    # need data-dependent shapes.

    # Two f() evaluations (no HBM concat of the two point sets).
    f_pairs = apply_fn(diff_pairs.reshape(-1), params).reshape(batch, n_pairs)
    f_mc = apply_fn(rand_time.reshape(-1), params).reshape(
        NUM_MC_SAMPLES, batch, maxlen)

    # lambda at each event: background + sum_{k<i} f(t_i - t_k)
    lambs = (jnp.zeros((batch, maxlen), jnp.float32).at[:, rows].add(f_pairs)
             + background)

    # Monte-Carlo estimate of the integral of lambda.
    lamb_int = jnp.mean((f_mc + EPS) * diff_w_last[None], axis=0)     # [B, L]
    lamb_ints = jnp.sum(lamb_int, axis=1) + te * background           # [B]

    # Sum of log-intensities over real (unpadded) events.  (No eps inside the
    # log, matching the reference module; background=1 keeps lambs > 0.)
    sum_log_lambs = jnp.sum(jnp.where(valid, jnp.log(lambs), 0.0))

    nll = -(sum_log_lambs - jnp.sum(lamb_ints)) / batch
    return nll


# ----------------------------------------------------------------------------
# Deterministic parameter init (shapes from the module's __init__).
# ----------------------------------------------------------------------------
def init_params(key, hidden_size):
    ks = jax.random.split(key, 8)

    def lin(kw, kb, fan_in, fan_out):
        bound = 1.0 / jnp.sqrt(jnp.float32(fan_in))
        w = jax.random.uniform(kw, (fan_in, fan_out), jnp.float32, -bound, bound)
        b = jax.random.uniform(kb, (1, fan_out), jnp.float32, -bound, bound)
        return w, b

    w1, b1 = lin(ks[0], ks[1], 1, hidden_size)
    w2, b2 = lin(ks[2], ks[3], hidden_size, hidden_size)
    w3, b3 = lin(ks[4], ks[5], hidden_size, hidden_size)
    w4, b4 = lin(ks[6], ks[7], hidden_size, 1)
    background = jnp.float32(1.0)  # torch.ones(1)
    return (w1, b1, w2, b2, w3, b3, w4, b4), background


if __name__ == "__main__":
    hidden_size = 32
    batch, maxlen = 2, 8

    root = jax.random.PRNGKey(0)
    k_params, k_times, k_mc = jax.random.split(root, 3)

    params, background = init_params(k_params, hidden_size)

    # Deterministic, sorted event timings; zero-padded past seq_len.
    seq_lens = jnp.array([8, 5], dtype=jnp.int32)
    incs = jax.random.uniform(k_times, (batch, maxlen), jnp.float32, 0.1, 1.0)
    times = jnp.cumsum(incs, axis=1)
    valid = jnp.arange(maxlen)[None, :] < seq_lens[:, None]
    times = jnp.where(valid, times, 0.0)
    seq_pads = times[..., None]                                       # [B, L, 1]

    run = functools.partial(forward, seq_pads, seq_lens, params, background,
                            t_end=None, mc_key=k_mc)

    # Reference (pure JAX) and the exact-precision (f32) Pallas path: tight check.
    nll_ref = jax.block_until_ready(run(apply_fn=apply_f_reference))
    nll_f32 = jax.block_until_ready(run(apply_fn=functools.partial(
        apply_f_pallas, compute_dtype=jnp.float32)))
    assert jnp.isfinite(nll_f32), "NLL (f32 Pallas) is not finite"
    assert jnp.allclose(nll_f32, nll_ref, rtol=1e-5, atol=1e-5), (nll_f32, nll_ref)

    # Fast path: bf16 hidden chain on bf16-native chips (v6e / v7x).  bf16
    # cannot meet a 1e-5 tolerance, so it gets a looser sanity check.
    cdt = _default_compute_dtype()
    if cdt is not jnp.float32:
        probe = jnp.linspace(0.0, 4.0, 1024, dtype=jnp.float32)
        f_fast = jax.block_until_ready(
            apply_f_pallas(probe, params, compute_dtype=cdt))
        f_ref = apply_f_reference(probe, params)
        assert jnp.all(jnp.isfinite(f_fast))
        assert jnp.allclose(f_fast, f_ref, rtol=1e-1, atol=1e-1), float(
            jnp.max(jnp.abs(f_fast - f_ref)))
        nll_fast = jax.block_until_ready(run(apply_fn=functools.partial(
            apply_f_pallas, compute_dtype=cdt)))
        assert jnp.isfinite(nll_fast), "NLL (bf16 Pallas) is not finite"

    print("KERNEL_OK")
</pallas_src>

<mosaic_0001>
module attributes {stable_mosaic.version = 11 : i64} {
  func.func @mlp_f_kernel(%arg0: i32, %arg1: memref<1x256xf32, #tpu.memory_space<vmem>>, %arg2: memref<32x8xf32, #tpu.memory_space<vmem>>, %arg3: memref<32x32xf32, #tpu.memory_space<vmem>>, %arg4: memref<32x32xf32, #tpu.memory_space<vmem>>, %arg5: memref<1x256xf32, #tpu.memory_space<vmem>>) attributes {dimension_semantics = [#tpu.dimension_semantics<parallel>], iteration_bounds = array<i64: 1>, scalar_prefetch = 0 : i64, scratch_operands = 0 : i64, tpu.core_type = #tpu.core_type<tc>, window_params = [{transform_indices = @transform_0, window_bounds = array<i64: 1, 256>}, {pipeline_mode = #tpu.pipeline_mode<synchronous>, transform_indices = @transform_1, window_bounds = array<i64: 32, 8>}, {pipeline_mode = #tpu.pipeline_mode<synchronous>, transform_indices = @transform_2, window_bounds = array<i64: 32, 32>}, {pipeline_mode = #tpu.pipeline_mode<synchronous>, transform_indices = @transform_3, window_bounds = array<i64: 32, 32>}, {transform_indices = @transform_4, window_bounds = array<i64: 1, 256>}]} {
    %c0 = arith.constant 0 : index
    %c0_0 = arith.constant 0 : index
    %0 = vector.load %arg2[%c0, %c0_0] : memref<32x8xf32, #tpu.memory_space<vmem>>, vector<32x8xf32>
    %1 = vector.extract_strided_slice %0 {offsets = [0, 0], sizes = [32, 1], strides = [1, 1]} : vector<32x8xf32> to vector<32x1xf32>
    %2 = vector.shape_cast %1 : vector<32x1xf32> to vector<32x1xf32>
    %3 = vector.broadcast %2 : vector<32x1xf32> to vector<32x256xf32>
    %4 = vector.extract_strided_slice %0 {offsets = [0, 1], sizes = [32, 1], strides = [1, 1]} : vector<32x8xf32> to vector<32x1xf32>
    %5 = vector.shape_cast %4 : vector<32x1xf32> to vector<32x1xf32>
    %6 = vector.broadcast %5 : vector<32x1xf32> to vector<32x256xf32>
    %7 = vector.extract_strided_slice %0 {offsets = [0, 2], sizes = [32, 1], strides = [1, 1]} : vector<32x8xf32> to vector<32x1xf32>
    %8 = vector.shape_cast %7 : vector<32x1xf32> to vector<32x1xf32>
    %9 = vector.broadcast %8 : vector<32x1xf32> to vector<32x256xf32>
    %10 = vector.extract_strided_slice %0 {offsets = [0, 3], sizes = [32, 1], strides = [1, 1]} : vector<32x8xf32> to vector<32x1xf32>
    %11 = vector.shape_cast %10 : vector<32x1xf32> to vector<32x1xf32>
    %12 = vector.broadcast %11 : vector<32x1xf32> to vector<32x256xf32>
    %13 = vector.extract_strided_slice %0 {offsets = [0, 4], sizes = [32, 1], strides = [1, 1]} : vector<32x8xf32> to vector<32x1xf32>
    %14 = vector.extract_strided_slice %0 {offsets = [0, 5], sizes = [1, 1], strides = [1, 1]} : vector<32x8xf32> to vector<1x1xf32>
    %c0_1 = arith.constant 0 : index
    %c0_2 = arith.constant 0 : index
    %15 = vector.load %arg3[%c0_1, %c0_2] : memref<32x32xf32, #tpu.memory_space<vmem>>, vector<32x32xf32>
    %c0_3 = arith.constant 0 : index
    %c0_4 = arith.constant 0 : index
    %16 = vector.load %arg4[%c0_3, %c0_4] : memref<32x32xf32, #tpu.memory_space<vmem>>, vector<32x32xf32>
    %c0_5 = arith.constant 0 : index
    %c0_6 = arith.constant 0 : index
    %17 = vector.load %arg1[%c0_5, %c0_6] : memref<1x256xf32, #tpu.memory_space<vmem>>, vector<1x256xf32>
    %18 = vector.broadcast %17 : vector<1x256xf32> to vector<32x256xf32>
    %19 = arith.mulf %3, %18 : vector<32x256xf32>
    %20 = arith.addf %19, %6 : vector<32x256xf32>
    %21 = math.tanh %20 : vector<32x256xf32>
    %cst = arith.constant dense<0.000000e+00> : vector<32x256xf32>
    %22 = tpu.matmul %15, %21, %cst {dimension_numbers = #tpu.dot_dimension_numbers<[1], [0], [0], [1], [0, 0, 1, 1], [], []>} : vector<32x32xf32>, vector<32x256xf32>, vector<32x256xf32> -> vector<32x256xf32>
    %23 = arith.addf %22, %9 : vector<32x256xf32>
    %24 = math.tanh %23 : vector<32x256xf32>
    %cst_7 = arith.constant dense<0.000000e+00> : vector<32x256xf32>
    %25 = tpu.matmul %16, %24, %cst_7 {dimension_numbers = #tpu.dot_dimension_numbers<[1], [0], [0], [1], [0, 0, 1, 1], [], []>} : vector<32x32xf32>, vector<32x256xf32>, vector<32x256xf32> -> vector<32x256xf32>
    %26 = arith.addf %25, %12 : vector<32x256xf32>
    %27 = math.tanh %26 : vector<32x256xf32>
    %28 = vector.broadcast %13 : vector<32x1xf32> to vector<32x256xf32>
    %29 = arith.mulf %28, %27 : vector<32x256xf32>
    %cst_8 = arith.constant dense<0.000000e+00> : vector<256xf32>
    %30 = vector.multi_reduction <add>, %29, %cst_8 [0] : vector<32x256xf32> to vector<256xf32>
    %31 = vector.shape_cast %30 : vector<256xf32> to vector<1x256xf32>
    %32 = vector.broadcast %14 : vector<1x1xf32> to vector<1x256xf32>
    %33 = arith.addf %31, %32 : vector<1x256xf32>
    %cst_9 = arith.constant 0.000000e+00 : f32
    %34 = vector.broadcast %cst_9 : f32 to vector<1x256xf32>
    %35 = arith.maximumf %33, %34 : vector<1x256xf32>
    %36 = math.absf %33 : vector<1x256xf32>
    %cst_10 = arith.constant 0.000000e+00 : f32
    %37 = vector.broadcast %cst_10 : f32 to vector<1x256xf32>
    %38 = arith.subf %37, %36 : vector<1x256xf32>
    %39 = math.exp %38 : vector<1x256xf32>
    %cst_11 = arith.constant 1.000000e+00 : f32
    %40 = vector.broadcast %cst_11 : f32 to vector<1x256xf32>
    %41 = arith.addf %40, %39 : vector<1x256xf32>
    %42 = math.log %41 : vector<1x256xf32>
    %43 = arith.addf %35, %42 : vector<1x256xf32>
    %c0_12 = arith.constant 0 : index
    %c0_13 = arith.constant 0 : index
    %44 = vector.load %arg5[%c0_12, %c0_13] : memref<1x256xf32, #tpu.memory_space<vmem>>, vector<1x256xf32>
    tpu.vector_store %arg5[%c0_12, %c0_13], %43 {strides = array<i32>} : memref<1x256xf32, #tpu.memory_space<vmem>>, vector<1x256xf32>,
    return
  }
  func.func @transform_0(%arg0: i32) -> (i32, i32) {
    %c0_i32 = arith.constant 0 : i32
    %c0_i32_0 = arith.constant 0 : i32
    return %c0_i32, %arg0 : i32, i32
  }
  func.func @transform_1(%arg0: i32) -> (i32, i32) {
    %c0_i32 = arith.constant 0 : i32
    %c0_i32_0 = arith.constant 0 : i32
    %c0_i32_1 = arith.constant 0 : i32
    return %c0_i32, %c0_i32_0 : i32, i32
  }
  func.func @transform_2(%arg0: i32) -> (i32, i32) {
    %c0_i32 = arith.constant 0 : i32
    %c0_i32_0 = arith.constant 0 : i32
    %c0_i32_1 = arith.constant 0 : i32
    return %c0_i32, %c0_i32_0 : i32, i32
  }
  func.func @transform_3(%arg0: i32) -> (i32, i32) {
    %c0_i32 = arith.constant 0 : i32
    %c0_i32_0 = arith.constant 0 : i32
    %c0_i32_1 = arith.constant 0 : i32
    return %c0_i32, %c0_i32_0 : i32, i32
  }
  func.func @transform_4(%arg0: i32) -> (i32, i32) {
    %c0_i32 = arith.constant 0 : i32
    %c0_i32_0 = arith.constant 0 : i32
    return %c0_i32, %arg0 : i32, i32
  }
}

</mosaic_0001>

<bundles_post_ra>
// kernel: tpu_custom_call.1
= control target key start
LH: loop header
LB: loop body
LE: loop exit
PB: predicated region body
PF: predicated region fallthrough
CT: control target
= control target key end

     0   :  { %9 = vsyncpa [#allocation3], 0  ;;  %s659_s0 = inlined_call_operand.vmem [shape: f32[1,256], index: 0, kind: input, shape index: {}]   ;;  %s660_s1 = inlined_call_operand.vmem [shape: f32[32,8], index: 1, kind: input, shape index: {}]   ;;  %s661_s2 = inlined_call_operand.vmem [shape: f32[32,32], index: 2, kind: input, shape index: {}]   ;;  %s662_s3 = inlined_call_operand.hbm [shape: f32[32,32], index: 3, kind: input, shape index: {}]   ;;  %s663_s4 = inlined_call_operand.hbm [shape: f32[1,256], index: 4, kind: output, shape index: {}]  }
   0x1   :  { %10 = vsyncpa [#allocation4], 0  ;;  %s21_s17 = sshll.u32 %s662_s3, 4  ;;  %s546_s18 = smov [#allocation2]   ;;  %s22_s17 = int_to_ptr.hbm [resolvable:$true] %s21_s17 }
   0x2   :  { %s23_s19 = sshll.u32 %s546_s18, 4  ;;  %s547_s20 = smov 128   ;;  %s24_s19 = int_to_ptr.vmem [resolvable:$true] %s23_s19 }
   0x3   :  { %s548_s21 = smov 8  }
   0x4   :  { %29 = dma.hbm_to_vmem [thread:$0]  %s22_s17, 512, %s24_s19, [#allocation3], %s547_s20, %s547_s20, %s548_s21  }
   0x5   :  { %542 = dma.done.wait [#allocation3], 512  }
   0x6   :  { %543 = vsyncadd [#allocation3], 4294966784  ;;  %v549_v0 = vmov 0   ;;  %v550_v1 = vmov 1   ;;  %v587_v2 = vld [vmem:[%s660_s1 + $0x18] sm:$0xff]  ;;  %v594_v3 = vld [vmem:[%s660_s1 + $0x10] sm:$0xff] }
   0x7   :  { %421 = vset.pattern.permute.xlu0 %v549_v0  ;;  %422 = vset.pattern.permute.xlu1 %v550_v1  ;;  %v600_v4 = vld [vmem:[%s660_s1 + $0x8] sm:$0xff]  ;;  %v607_v5 = vld [vmem:[%s660_s1] sm:$0xff]  ;;  %v551_v17 = vmov 2   ;;  %vm144_vm0 = vcmask 261120   ;;  %v108_v44 = vld [vmem:[%s661_s2 + $0x10] sm:$0xff]  ;;  %v552_v53 = vmov 3  }
   0x8   :  { %424 = vset.pattern.permute.xlu2 %v550_v1  ;;  %55 = vperm.xlu0 %421, %v587_v2   ;;  %v114_v6 = vld [vmem:[%s659_s0] sm:$0x3]  ;;  %v107_v43 = vld [vmem:[%s661_s2 + $0x8] sm:$0xff]  ;;  %v109_v45 = vld [vmem:[%s661_s2 + $0x18] sm:$0xff]  ;;  %s385_s14 = sshll.u32 %s663_s4, 4  ;;  %vm370_vm1 = vcmask 1040384   ;;  %s386_s14 = int_to_ptr.hbm [resolvable:$true] %s385_s14 }
   0x9   :  { %71 = vperm.xlu1 %422, %v587_v2   ;;  %67 = vperm.xlu2 %424, %v594_v3   ;;  %v116_v7 = vperm.slane %v114_v6, 0  ;;  %v117_v8 = vperm.slane %v114_v6, 1  ;;  %v106_v40 = vld [vmem:[%s661_s2] sm:$0xff]  ;;  %s555_s2 = smov [#allocation5]  }
   0xa   :  { %s383_s11 = sshll.u32 %s555_s2, 4  ;;  %s384_s11 = int_to_ptr.vmem [resolvable:$true] %s383_s11 }
  0x10   :  { %50 = vperm.xlu0 %421, %v594_v3  }
  0x11   :  { %423 = vset.pattern.permute.xlu1 %v549_v0  ;;  %425 = vset.pattern.permute.xlu2 %v549_v0 }
  0x12   :  { %45 = vperm.xlu1 %423, %v600_v4   ;;  %40 = vperm.xlu2 %425, %v607_v5  }
  0x18   :  { %426 = vset.pattern.permute.xlu0 %v550_v1 }
  0x19   :  { %63 = vperm.xlu0 %426, %v600_v4  }
  0x1a   :  { %427 = vset.pattern.permute.xlu1 %v550_v1  ;;  %428 = vset.pattern.permute.xlu2 %v551_v17 }
  0x1b   :  { %59 = vperm.xlu1 %427, %v607_v5   ;;  %87 = vperm.xlu2 %428, %v587_v2  }
  0x21   :  { %430 = vset.pattern.permute.xlu0 %v551_v17 }
  0x22   :  { %75 = vperm.xlu0 %430, %v607_v5  }
  0x23   :  { %429 = vset.pattern.permute.xlu1 %v551_v17  ;;  %79 = vperm.xlu2 %428, %v600_v4   ;;  %v554_v17 = vmov 5  }
  0x24   :  { %83 = vperm.xlu1 %429, %v594_v3  }
  0x2b   :  { %432 = vset.pattern.permute.xlu2 %v552_v53 }
  0x2c   :  { %431 = vset.pattern.permute.xlu1 %v552_v53  ;;  %95 = vperm.xlu2 %432, %v600_v4  }
  0x2d   :  { %91 = vperm.xlu1 %431, %v607_v5  }
  0x34   :  { %103 = vperm.xlu2 %432, %v587_v2  }
  0x35   :  { %99 = vperm.xlu1 %431, %v594_v3  }
  0x63   :  { %v68_v13 = vpop.permute.xlu2 %67 }
  0x6c   :  { %v41_v25 = vpop.permute.xlu2 %40 }
  0x6d   :  { %v120_v26 = vmul.f32 %v116_v7, %v41_v25  ;;  %v121_v27 = vmul.f32 %v117_v8, %v41_v25 }
  0x75   :  { %v88_v50 = vpop.permute.xlu2 %87 }
  0x7a   :  { %v56_v9 = vpop.permute.xlu0 %55 }
  0x7b   :  { %v72_v10 = vpop.permute.xlu1 %71  ;;  %v126_v11 = vmul.f32 %v116_v7, %v56_v9  ;;  %v127_v12 = vmul.f32 %v117_v8, %v56_v9 }
  0x7d   :  { %v134_v14 = vadd.f32 %v126_v11, %v72_v10  ;;  %v135_v15 = vadd.f32 %v127_v12, %v72_v10  ;;  %v80_v56 = vpop.permute.xlu2 %79  ;;  %v553_v10 = vmov 4  }
  0x7e   :  { %433 = vset.pattern.permute.xlu0 %v553_v10  ;;  %434 = vset.pattern.permute.xlu1 %v553_v10 }
  0x7f   :  { %438 = vtanh.f32 %v134_v14  ;;  %302 = vperm.xlu0 %433, %v607_v5   ;;  %v110_v14 = vld [vmem:[#allocation2] sm:$0xff]  ;;  %306 = vperm.xlu1 %434, %v600_v4   ;;  %v112_v4 = vld [vmem:[#allocation2 + $0x10] sm:$0xff] }
  0x80   :  { %440 = vtanh.f32 %v135_v15  ;;  %435 = vset.pattern.permute.xlu2 %v553_v10 }
  0x81   :  { %310 = vperm.xlu2 %435, %v594_v3   ;;  %v113_v3 = vld [vmem:[#allocation2 + $0x18] sm:$0xff] }
  0x82   :  { %v51_v16 = vpop.permute.xlu0 %50 }
  0x83   :  { %v124_v18 = vmul.f32 %v116_v7, %v51_v16  ;;  %v125_v19 = vmul.f32 %v117_v8, %v51_v16 }
  0x84   :  { %v46_v20 = vpop.permute.xlu1 %45 }
  0x85   :  { %v439_v21 = vpop.eup %438  ;;  %v132_v22 = vadd.f32 %v124_v18, %v68_v13  ;;  %v133_v23 = vadd.f32 %v125_v19, %v68_v13  ;;  %v122_v28 = vmul.f32 %v116_v7, %v46_v20  ;;  %v123_v29 = vmul.f32 %v117_v8, %v46_v20  ;;  %v111_v18 = vld [vmem:[#allocation2 + $0x8] sm:$0xff] }
  0x86   :  { %v441_v24 = vpop.eup %440  ;;  %169 = vmatpush.msra.mxu0 %v439_v21 }
  0x87   :  { %442 = vtanh.f32 %v132_v22  ;;  %198 = vmatpush.msra.mxu1 %v441_v24  ;;  %437 = vset.pattern.permute.xlu0 %v554_v17  ;;  %v96_v22 = vpop.permute.xlu2 %95 }
  0x88   :  { %444 = vtanh.f32 %v133_v23  ;;  %314 = vperm.xlu1 %434, %v587_v2  }
  0x89   :  { %436 = vset.pattern.permute.xlu2 %v554_v17 }
  0x8a   :  { %344 = vperm.xlu2 %436, %v607_v5  }
  0x8b   :  { %v64_v30 = vpop.permute.xlu0 %63 }
  0x8c   :  { %v130_v31 = vadd.f32 %v122_v28, %v64_v30  ;;  %v131_v32 = vadd.f32 %v123_v29, %v64_v30 }
  0x8d   :  { %v60_v33 = vpop.permute.xlu1 %59  ;;  %v443_v34 = vpop.eup %442 }
  0x8e   :  { %v128_v35 = vadd.f32 %v120_v26, %v60_v33  ;;  %v129_v36 = vadd.f32 %v121_v27, %v60_v33  ;;  %v445_v37 = vpop.eup %444  ;;  %446 = vtanh.f32 %v130_v31  ;;  %170 = vmatpush.msra.mxu0 %v443_v34 }
  0x8f   :  { %448 = vtanh.f32 %v131_v32  ;;  %199 = vmatpush.msra.mxu1 %v445_v37  ;;  %v104_v32 = vpop.permute.xlu2 %103 }
  0x90   :  { %450 = vtanh.f32 %v128_v35 }
  0x91   :  { %452 = vtanh.f32 %v129_v36 }
  0x94   :  { %v447_v38 = vpop.eup %446  ;;  %v76_v62 = vpop.permute.xlu0 %75 }
  0x95   :  { %v449_v39 = vpop.eup %448  ;;  %171 = vmatpush.msra.mxu0 %v447_v38 }
  0x96   :  { %v451_v41 = vpop.eup %450  ;;  %200 = vmatpush.msra.mxu1 %v449_v39  ;;  %v84_v54 = vpop.permute.xlu1 %83 }
  0x97   :  { %v453_v42 = vpop.eup %452  ;;  %172 = vmatpush.msra.mxu0 %v451_v41 }
  0x98   :  { %201 = vmatpush.msra.mxu1 %v453_v42  ;;  %395 = vmatmul.msk.f32.vlgmr.msra.gmra.mxu0 %vm144_vm0, %v106_v40 }
  0x99   :  { %399 = vmatmul.msk.f32.vlgmr.msra.gmra.mxu1 %vm144_vm0, %v106_v40 }
  0x9f   :  { %v92_v2 = vpop.permute.xlu1 %91 }
  0xa0   :  { %396 = vmatmul.msk.f32.gmra.mxu0 %vm144_vm0, %v107_v43 }
  0xa1   :  { %400 = vmatmul.msk.f32.gmra.mxu1 %vm144_vm0, %v107_v43 }
  0xa7   :  { %v100_v5 = vpop.permute.xlu1 %99 }
  0xa8   :  { %397 = vmatmul.msk.f32.gmra.mxu0 %vm144_vm0, %v108_v44 }
  0xa9   :  { %401 = vmatmul.msk.f32.gmra.mxu1 %vm144_vm0, %v108_v44 }
  0xb0   :  { %398 = vmatmul.msk.f32.gmra.mxu0 %vm144_vm0, %v109_v45 }
  0xb1   :  { %402 = vmatmul.msk.f32.gmra.mxu1 %vm144_vm0, %v109_v45 }
  0xdb   :  { %v311_v43 = vpop.permute.xlu2 %310 }
  0xf1   :  { %v307_v34 = vpop.permute.xlu1 %306  ;;  %v303_v45 = vpop.permute.xlu0 %302 }
 0x115   :  { %v174_v46 = vpop.f32.mrf.mxu0 }
 0x116   :  { %v203_v47 = vpop.f32.mrf.mxu1  ;;  %v175_v1 = vadd.f32 %v174_v46, %v76_v62 }
 0x117   :  { %v204_v6 = vadd.f32 %v203_v47, %v76_v62 }
 0x11d   :  { %v177_v48 = vpop.f32.mrf.mxu0 }
 0x11e   :  { %v206_v49 = vpop.f32.mrf.mxu1  ;;  %v178_v63 = vadd.f32 %v177_v48, %v80_v56 }
 0x11f   :  { %v207_v0 = vadd.f32 %v206_v49, %v80_v56 }
 0x125   :  { %v180_v51 = vpop.f32.mrf.mxu0 }
 0x126   :  { %v209_v52 = vpop.f32.mrf.mxu1  ;;  %v181_v57 = vadd.f32 %v180_v51, %v84_v54 }
 0x127   :  { %v210_v60 = vadd.f32 %v209_v52, %v84_v54 }
 0x12d   :  { %v183_v55 = vpop.f32.mrf.mxu0 }
 0x12e   :  { %v184_v58 = vadd.f32 %v183_v55, %v88_v50  ;;  %v212_v59 = vpop.f32.mrf.mxu1  ;;  %v315_v55 = vpop.permute.xlu1 %314 }
 0x12f   :  { %v213_v61 = vadd.f32 %v212_v59, %v88_v50 }
 0x130   :  { %454 = vtanh.f32 %v184_v58 }
 0x131   :  { %456 = vtanh.f32 %v213_v61 }
 0x132   :  { %458 = vtanh.f32 %v181_v57 }
 0x133   :  { %460 = vtanh.f32 %v210_v60 }
 0x134   :  { %462 = vtanh.f32 %v178_v63 }
 0x135   :  { %464 = vtanh.f32 %v207_v0 }
 0x136   :  { %v455_v7 = vpop.eup %454  ;;  %466 = vtanh.f32 %v175_v1 }
 0x137   :  { %v457_v8 = vpop.eup %456  ;;  %468 = vtanh.f32 %v204_v6  ;;  %247 = vmatpush.msra.mxu2 %v455_v7 }
 0x138   :  { %v459_v9 = vpop.eup %458  ;;  %276 = vmatpush.msra.mxu3 %v457_v8 }
 0x139   :  { %v461_v11 = vpop.eup %460  ;;  %248 = vmatpush.msra.mxu2 %v459_v9 }
 0x13a   :  { %v463_v12 = vpop.eup %462  ;;  %277 = vmatpush.msra.mxu3 %v461_v11 }
 0x13b   :  { %v465_v13 = vpop.eup %464  ;;  %249 = vmatpush.msra.mxu2 %v463_v12 }
 0x13c   :  { %v467_v15 = vpop.eup %466  ;;  %278 = vmatpush.msra.mxu3 %v465_v13  ;;  %v345_v13 = vpop.permute.xlu2 %344 }
 0x13d   :  { %v469_v16 = vpop.eup %468  ;;  %250 = vmatpush.msra.mxu2 %v467_v15 }
 0x13e   :  { %279 = vmatpush.msra.mxu3 %v469_v16  ;;  %403 = vmatmul.msk.f32.vlgmr.msra.gmra.mxu2 %vm144_vm0, %v110_v14 }
 0x13f   :  { %407 = vmatmul.msk.f32.vlgmr.msra.gmra.mxu3 %vm144_vm0, %v110_v14 }
 0x146   :  { %404 = vmatmul.msk.f32.gmra.mxu2 %vm144_vm0, %v111_v18 }
 0x147   :  { %408 = vmatmul.msk.f32.gmra.mxu3 %vm144_vm0, %v111_v18 }
 0x14e   :  { %405 = vmatmul.msk.f32.gmra.mxu2 %vm144_vm0, %v112_v4 }
 0x14f   :  { %409 = vmatmul.msk.f32.gmra.mxu3 %vm144_vm0, %v112_v4 }
 0x156   :  { %406 = vmatmul.msk.f32.gmra.mxu2 %vm144_vm0, %v113_v3 }
 0x157   :  { %410 = vmatmul.msk.f32.gmra.mxu3 %vm144_vm0, %v113_v3 }
 0x1c1   :  { %v252_v19 = vpop.f32.mrf.mxu2 }
 0x1c2   :  { %v281_v20 = vpop.f32.mrf.mxu3  ;;  %v253_v24 = vadd.f32 %v252_v19, %v92_v2 }
 0x1c3   :  { %v282_v25 = vadd.f32 %v281_v20, %v92_v2 }
 0x1c4   :  { %470 = vtanh.f32 %v253_v24 }
 0x1c5   :  { %472 = vtanh.f32 %v282_v25 }
 0x1c9   :  { %v255_v21 = vpop.f32.mrf.mxu2 }
 0x1ca   :  { %v284_v23 = vpop.f32.mrf.mxu3  ;;  %v256_v26 = vadd.f32 %v255_v21, %v96_v22  ;;  %v471_v33 = vpop.eup %470 }
 0x1cb   :  { %v285_v27 = vadd.f32 %v284_v23, %v96_v22  ;;  %v473_v35 = vpop.eup %472  ;;  %v317_v48 = vmul.f32 %v471_v33, %v303_v45 }
 0x1cc   :  { %474 = vtanh.f32 %v256_v26  ;;  %v318_v50 = vmul.f32 %v473_v35, %v303_v45 }
 0x1cd   :  { %476 = vtanh.f32 %v285_v27 }
 0x1d1   :  { %v258_v28 = vpop.f32.mrf.mxu2 }
 0x1d2   :  { %v259_v29 = vadd.f32 %v258_v28, %v100_v5  ;;  %v287_v30 = vpop.f32.mrf.mxu3  ;;  %v475_v37 = vpop.eup %474 }
 0x1d3   :  { %v288_v31 = vadd.f32 %v287_v30, %v100_v5  ;;  %v477_v40 = vpop.eup %476  ;;  %v319_v46 = vmul.f32 %v475_v37, %v307_v34 }
 0x1d4   :  { %478 = vtanh.f32 %v259_v29  ;;  %v320_v47 = vmul.f32 %v477_v40, %v307_v34  ;;  %v373_v29 = vlaneseq }
 0x1d5   :  { %480 = vtanh.f32 %v288_v31  ;;  %v325_v52 = vadd.f32 %v319_v46, %v317_v48 }
 0x1d6   :  { %v334_v54 = vadd.f32 %v320_v47, %v318_v50  ;;  %vm375_vm2 = vcmp.lt.s32.totalorder %v373_v29, 256 }
 0x1d9   :  { %v261_v36 = vpop.f32.mrf.mxu2 }
 0x1da   :  { %v262_v38 = vadd.f32 %v261_v36, %v104_v32  ;;  %v290_v39 = vpop.f32.mrf.mxu3  ;;  %v479_v42 = vpop.eup %478 }
 0x1db   :  { %v291_v41 = vadd.f32 %v290_v39, %v104_v32  ;;  %v481_v44 = vpop.eup %480  ;;  %v321_v49 = vmul.f32 %v479_v42, %v311_v43 }
 0x1dc   :  { %482 = vtanh.f32 %v262_v38  ;;  %v322_v51 = vmul.f32 %v481_v44, %v311_v43 }
 0x1dd   :  { %484 = vtanh.f32 %v291_v41  ;;  %v326_v58 = vadd.f32 %v325_v52, %v321_v49 }
 0x1de   :  { %v335_v60 = vadd.f32 %v334_v54, %v322_v51 }
 0x1e2   :  { %v483_v53 = vpop.eup %482 }
 0x1e3   :  { %v485_v56 = vpop.eup %484  ;;  %v323_v57 = vmul.f32 %v483_v53, %v315_v55 }
 0x1e4   :  { %v324_v59 = vmul.f32 %v485_v56, %v315_v55 }
 0x1e5   :  { %v327_v61 = vadd.f32 %v326_v58, %v323_v57 }
 0x1e6   :  { %v336_v62 = vadd.f32 %v335_v60, %v324_v59 }
 0x1e7   :  { %v328_v63 = vrot.slane %v327_v61, 4 }
 0x1e8   :  { %v337_v0 = vrot.slane %v336_v62, 4 }
 0x1e9   :  { %v329_v1 = vadd.f32 %v328_v63, %v327_v61 }
 0x1ea   :  { %v338_v6 = vadd.f32 %v337_v0, %v336_v62 }
 0x1eb   :  { %v330_v7 = vrot.slane %v329_v1, 2 }
 0x1ec   :  { %v339_v8 = vrot.slane %v338_v6, 2 }
 0x1ed   :  { %v331_v9 = vadd.f32 %v330_v7, %v329_v1 }
 0x1ee   :  { %v340_v10 = vadd.f32 %v339_v8, %v338_v6 }
 0x1ef   :  { %v332_v11 = vrot.slane %v331_v9, 1 }
 0x1f0   :  { %v341_v12 = vrot.slane %v340_v10, 1 }
 0x1f1   :  { %v333_v14 = vadd.f32 %v332_v11, %v331_v9 }
 0x1f2   :  { %v342_v15 = vadd.f32 %v341_v12, %v340_v10 }
 0x1f3   :  { %v347_v16 = vadd.f32 %v345_v13, %v333_v14 }
 0x1f4   :  { %v348_v17 = vadd.f32 %v345_v13, %v342_v15 }
 0x1f5   :  { %v351_v18 = vand.u32 2147483647, %v347_v16  ;;  %v349_v30 = vmax.f32 %v347_v16, 0.0 }
 0x1f6   :  { %v352_v4 = vand.u32 2147483647, %v348_v17  ;;  %v350_v26 = vmax.f32 %v348_v17, 0.0 }
 0x1f7   :  { %v353_v3 = vsub.f32 0.0, %v351_v18 }
 0x1f8   :  { %v354_v19 = vsub.f32 0.0, %v352_v4 }
 0x1f9   :  { %v355_v20 = vmul.f32 1.442695, %v353_v3 }
 0x1fa   :  { %v357_v2 = vmul.f32 1.442695, %v354_v19 }
 0x1fb   :  { %486 = vpow2.f32 %v355_v20 }
 0x1fc   :  { %488 = vpow2.f32 %v357_v2 }
 0x201   :  { %v487_v21 = vpop.eup %486 }
 0x202   :  { %v489_v22 = vpop.eup %488  ;;  %v359_v23 = vadd.f32 1.0, %v487_v21 }
 0x203   :  { %v360_v24 = vadd.f32 1.0, %v489_v22 }
 0x204   :  { %490 = vlog2.f32 %v359_v23 }
 0x205   :  { %492 = vlog2.f32 %v360_v24 }
 0x20a   :  { %v491_v5 = vpop.eup %490 }
 0x20b   :  { %v493_v25 = vpop.eup %492  ;;  %v362_v27 = vmul.f32 0.6931472, %v491_v5 }
 0x20c   :  { %v364_v28 = vmul.f32 0.6931472, %v493_v25 }
 0x20d   :  { %v365_v32 = vadd.f32 %v362_v27, %v349_v30 }
 0x20e   :  { %v366_v31 = vadd.f32 %v364_v28, %v350_v26 }
 0x210   :  { %v369_v33 = vrot.slane %v366_v31, 7 }
 0x212   :  { %v371_v34 = vsel %vm370_vm1, %v365_v32, %v369_v33 }
 0x213   :  { %377 = vst.msk [vmem:[#allocation5] sm:$0x3] %vm375_vm2, %v371_v34 }
 0x214   :  { %388 = dma.vmem_to_hbm [thread:$0]  %s384_s11, 32, %s386_s14, [#allocation4]  }
 0x215   :  { %544 = dma.done.wait [#allocation4], 32  }
 0x216   :  { %545 = vsyncadd [#allocation4], 4294967264 }
 0x217   :  { %393 = vsyncpa [#allocation3], 1 }
 0x218   :  { %394 = vsyncpa [#allocation4], 1 }

</bundles_post_ra>
